<compile_context>
chip_gen: v7x
topology: tpu7x:2x2x1
jax: 0.10.0
libtpu: 0.0.40
codegen_flags: <defaults>
</compile_context>

<pallas_src>
import functools

import jax
import jax.numpy as jnp
from jax.experimental import pallas as pl
from jax.experimental.pallas import tpu as pltpu

PAD = 128                    # lane-width padding for hidden/action feature dims
BIAS_ROW = PAD               # row inside the packed slab holding the biases
SLAB_ROWS = PAD + 8          # 136 rows (sublane-aligned)
SLAB_COLS = 3 * PAD          # 384 cols: [w1 | w2 | w3] blocks


def qnetwork_kernel(x_ref, p_ref, out_ref):
    """One batch block: (TB, S) activations x one resident (136, 384) param slab."""
    state_size = x_ref.shape[-1]        # static
    action_size = out_ref.shape[-1]     # static
    cdt = p_ref.dtype                   # MXU compute dtype (f32 or bf16 slab)

    x = x_ref[...].astype(cdt)                                   # (TB, S)

    # fc1 + ReLU : (TB, S) @ (S, 128) — K = state_size, no lane padding needed.
    w1 = p_ref[0:state_size, 0:PAD]
    b1 = p_ref[BIAS_ROW:BIAS_ROW + 1, 0:PAD].astype(jnp.float32)
    h1 = jnp.dot(x, w1, preferred_element_type=jnp.float32) + b1
    h1 = jnp.maximum(h1, 0.0)

    # fc2 + ReLU : padded rows/lanes are exact zeros -> mathematically inert.
    w2 = p_ref[0:PAD, PAD:2 * PAD]
    b2 = p_ref[BIAS_ROW:BIAS_ROW + 1, PAD:2 * PAD].astype(jnp.float32)
    h2 = jnp.dot(h1.astype(cdt), w2, preferred_element_type=jnp.float32) + b2
    h2 = jnp.maximum(h2, 0.0)

    # fc3 (no activation).
    w3 = p_ref[0:PAD, 2 * PAD:3 * PAD]
    b3 = p_ref[BIAS_ROW:BIAS_ROW + 1, 2 * PAD:3 * PAD].astype(jnp.float32)
    q = jnp.dot(h2.astype(cdt), w3, preferred_element_type=jnp.float32) + b3

    # Narrow (TB, action_size) store: accepts a masked vst, but output HBM
    # bytes drop ~32x vs. the old full-128-lane writeback + wrapper slice.
    out_ref[...] = q[:, :action_size].astype(out_ref.dtype)


def _round_up(x, m):
    return ((x + m - 1) // m) * m


@functools.partial(jax.jit, static_argnames=("action_size", "block_rows"))
def qnetwork_forward(state, packed_params, *, action_size, block_rows=1024):
    """state: [B, state_size]; packed_params: [136, 384] slab (f32 or bf16)."""
    B, state_size = state.shape
    assert state_size <= PAD and action_size <= PAD, "feature dims must be <= 128"

    # Batch tile: multiple of 8 (sublane rule) when the grid has >1 step, big
    # enough to avoid grid-step overhead, and capped at ~half the batch so
    # mid/large batches keep >=2 blocks for v7x megacore sharding.  If one
    # tile covers the whole batch, use exactly B (block == array dim is legal).
    tb_target = max(8, _round_up(-(-B // 2), 8))
    tb = min(_round_up(block_rows, 8), tb_target)
    if tb >= B:
        tb = B
    grid = (pl.cdiv(B, tb),)   # ragged last block OK: OOB rows are dropped

    out = pl.pallas_call(
        qnetwork_kernel,
        out_shape=jax.ShapeDtypeStruct((B, action_size), jnp.float32),
        grid_spec=pltpu.PrefetchScalarGridSpec(
            num_scalar_prefetch=0,
            grid=grid,
            in_specs=[
                pl.BlockSpec((tb, state_size), lambda i: (i, 0)),         # state rows
                pl.BlockSpec((SLAB_ROWS, SLAB_COLS), lambda i: (0, 0)),   # resident params
            ],
            out_specs=pl.BlockSpec((tb, action_size), lambda i: (i, 0)),
        ),
        compiler_params=pltpu.CompilerParams(
            dimension_semantics=("parallel",),   # split batch across TCs on v7x
            vmem_limit_bytes=32 << 20,           # safe on v7x's 64 MiB VMEM too
        ),
    )(state.astype(jnp.float32), packed_params)
    return out


def init_qnetwork_params(key, state_size, action_size, fc1_units=64, fc2_units=64):
    """Mirrors nn.Linear default init U(-1/sqrt(fan_in), +1/sqrt(fan_in)).

    Weights stored as [in, out] (transposed vs. PyTorch) for the x @ W kernel."""
    def linear(k, fan_in, fan_out):
        kw, kb = jax.random.split(k)
        bound = 1.0 / jnp.sqrt(fan_in)
        w = jax.random.uniform(kw, (fan_in, fan_out), jnp.float32, -bound, bound)
        b = jax.random.uniform(kb, (1, fan_out), jnp.float32, -bound, bound)
        return w, b

    k1, k2, k3 = jax.random.split(key, 3)
    w1, b1 = linear(k1, state_size, fc1_units)
    w2, b2 = linear(k2, fc1_units, fc2_units)
    w3, b3 = linear(k3, fc2_units, action_size)
    return {"w1": w1, "b1": b1, "w2": w2, "b2": b2, "w3": w3, "b3": b3}


def pack_qnetwork_params(params, dtype=jnp.float32):
    """Pack all weights/biases into one zero-padded [136, 384] VMEM slab.

    Layout: rows 0:128 hold the (zero-padded) 128x128 weight blocks
    [w1 | w2 | w3]; row 128 holds the biases; rows 129:136 are sublane padding.
    Zero padding keeps unused lanes mathematically inert end-to-end (bias 0,
    ReLU(0) = 0), so the narrow output slice is exact.  Use dtype=jnp.bfloat16
    for single-pass bf16 MXU dots (recommended on v5e)."""
    slab = jnp.zeros((SLAB_ROWS, SLAB_COLS), dtype)

    def put(slab, col, w, b):
        fin, fout = w.shape
        assert fin <= PAD and fout <= PAD, "feature dims must be <= 128"
        slab = slab.at[:fin, col:col + fout].set(w.astype(dtype))
        slab = slab.at[BIAS_ROW, col:col + fout].set(b.reshape(-1).astype(dtype))
        return slab

    slab = put(slab, 0 * PAD, params["w1"], params["b1"])
    slab = put(slab, 1 * PAD, params["w2"], params["b2"])
    slab = put(slab, 2 * PAD, params["w3"], params["b3"])
    return slab


def qnetwork_ref(state, params):
    """Pure-JAX reference for correctness checking."""
    h1 = jnp.maximum(state @ params["w1"] + params["b1"], 0.0)
    h2 = jnp.maximum(h1 @ params["w2"] + params["b2"], 0.0)
    return h2 @ params["w3"] + params["b3"]


if __name__ == "__main__":
    key = jax.random.PRNGKey(0)
    k_params, k_s1, k_s2, k_s3 = jax.random.split(key, 4)

    state_size = 8     # e.g. LunarLander-like observation dim
    action_size = 4
    params = init_qnetwork_params(k_params, state_size, action_size,
                                  fc1_units=64, fc2_units=64)
    packed_f32 = pack_qnetwork_params(params)                      # f32 slab
    packed_bf16 = pack_qnetwork_params(params, dtype=jnp.bfloat16)  # v5e-friendly

    # Small batch: single full-array block (tb == B).
    state = jax.random.normal(k_s1, (8, state_size), jnp.float32)
    q = qnetwork_forward(state, packed_f32, action_size=action_size)
    jax.block_until_ready(q)
    q_ref = qnetwork_ref(state, params)
    assert q.shape == (8, action_size)
    assert jnp.allclose(q, q_ref, atol=1e-4, rtol=1e-4), "mismatch vs reference (B=8)"

    # Larger batch: 2 grid blocks with a ragged last block (300 = 152 + 148).
    state2 = jax.random.normal(k_s2, (300, state_size), jnp.float32)
    q2 = qnetwork_forward(state2, packed_f32, action_size=action_size)
    jax.block_until_ready(q2)
    q2_ref = qnetwork_ref(state2, params)
    assert q2.shape == (300, action_size)
    assert jnp.allclose(q2, q2_ref, atol=1e-4, rtol=1e-4), "mismatch vs reference (B=300)"

    # Tiny batch not a multiple of 8: block == full array (still legal).
    state3 = jax.random.normal(k_s3, (5, state_size), jnp.float32)
    q3 = qnetwork_forward(state3, packed_f32, action_size=action_size)
    jax.block_until_ready(q3)
    q3_ref = qnetwork_ref(state3, params)
    assert q3.shape == (5, action_size)
    assert jnp.allclose(q3, q3_ref, atol=1e-4, rtol=1e-4), "mismatch vs reference (B=5)"

    # bf16 parameter slab (v5e-optimized path): f32 accumulation, looser tol.
    q2_bf16 = qnetwork_forward(state2, packed_bf16, action_size=action_size)
    jax.block_until_ready(q2_bf16)
    assert jnp.allclose(q2_bf16, q2_ref, atol=5e-2, rtol=5e-2), "mismatch vs reference (bf16)"

    print("KERNEL_OK")
</pallas_src>

<mosaic_0001>
module attributes {stable_mosaic.version = 11 : i64} {
  func.func @qnetwork_kernel(%arg0: i32, %arg1: memref<8x8xf32, #tpu.memory_space<vmem>>, %arg2: memref<136x384xf32, #tpu.memory_space<vmem>>, %arg3: memref<8x4xf32, #tpu.memory_space<vmem>>) attributes {dimension_semantics = [#tpu.dimension_semantics<parallel>], iteration_bounds = array<i64: 1>, scalar_prefetch = 0 : i64, scratch_operands = 0 : i64, tpu.core_type = #tpu.core_type<tc>, window_params = [{transform_indices = @transform_0, window_bounds = array<i64: 8, 8>}, {pipeline_mode = #tpu.pipeline_mode<synchronous>, transform_indices = @transform_1, window_bounds = array<i64: 136, 384>}, {transform_indices = @transform_2, window_bounds = array<i64: 8, 4>}]} {
    %c0 = arith.constant 0 : index
    %c0_0 = arith.constant 0 : index
    %0 = vector.load %arg1[%c0, %c0_0] : memref<8x8xf32, #tpu.memory_space<vmem>>, vector<8x8xf32>
    %c0_1 = arith.constant 0 : index
    %c0_2 = arith.constant 0 : index
    %1 = vector.load %arg2[%c0_1, %c0_2] : memref<136x384xf32, #tpu.memory_space<vmem>>, vector<8x128xf32>
    %c128 = arith.constant 128 : index
    %c0_3 = arith.constant 0 : index
    %2 = vector.load %arg2[%c128, %c0_3] : memref<136x384xf32, #tpu.memory_space<vmem>>, vector<1x128xf32>
    %cst = arith.constant dense<0.000000e+00> : vector<8x128xf32>
    %3 = tpu.matmul %0, %1, %cst {dimension_numbers = #tpu.dot_dimension_numbers<[1], [0], [0], [1], [0, 0, 1, 1], [], []>} : vector<8x8xf32>, vector<8x128xf32>, vector<8x128xf32> -> vector<8x128xf32>
    %4 = vector.broadcast %2 : vector<1x128xf32> to vector<8x128xf32>
    %5 = arith.addf %3, %4 : vector<8x128xf32>
    %cst_4 = arith.constant 0.000000e+00 : f32
    %6 = vector.broadcast %cst_4 : f32 to vector<8x128xf32>
    %7 = arith.maximumf %5, %6 : vector<8x128xf32>
    %c0_5 = arith.constant 0 : index
    %c128_6 = arith.constant 128 : index
    %8 = vector.load %arg2[%c0_5, %c128_6] : memref<136x384xf32, #tpu.memory_space<vmem>>, vector<128x128xf32>
    %c128_7 = arith.constant 128 : index
    %c128_8 = arith.constant 128 : index
    %9 = vector.load %arg2[%c128_7, %c128_8] : memref<136x384xf32, #tpu.memory_space<vmem>>, vector<1x128xf32>
    %cst_9 = arith.constant dense<0.000000e+00> : vector<8x128xf32>
    %10 = tpu.matmul %7, %8, %cst_9 {dimension_numbers = #tpu.dot_dimension_numbers<[1], [0], [0], [1], [0, 0, 1, 1], [], []>} : vector<8x128xf32>, vector<128x128xf32>, vector<8x128xf32> -> vector<8x128xf32>
    %11 = vector.broadcast %9 : vector<1x128xf32> to vector<8x128xf32>
    %12 = arith.addf %10, %11 : vector<8x128xf32>
    %cst_10 = arith.constant 0.000000e+00 : f32
    %13 = vector.broadcast %cst_10 : f32 to vector<8x128xf32>
    %14 = arith.maximumf %12, %13 : vector<8x128xf32>
    %c0_11 = arith.constant 0 : index
    %c256 = arith.constant 256 : index
    %15 = vector.load %arg2[%c0_11, %c256] : memref<136x384xf32, #tpu.memory_space<vmem>>, vector<128x128xf32>
    %c128_12 = arith.constant 128 : index
    %c256_13 = arith.constant 256 : index
    %16 = vector.load %arg2[%c128_12, %c256_13] : memref<136x384xf32, #tpu.memory_space<vmem>>, vector<1x128xf32>
    %cst_14 = arith.constant dense<0.000000e+00> : vector<8x128xf32>
    %17 = tpu.matmul %14, %15, %cst_14 {dimension_numbers = #tpu.dot_dimension_numbers<[1], [0], [0], [1], [0, 0, 1, 1], [], []>} : vector<8x128xf32>, vector<128x128xf32>, vector<8x128xf32> -> vector<8x128xf32>
    %18 = vector.broadcast %16 : vector<1x128xf32> to vector<8x128xf32>
    %19 = arith.addf %17, %18 : vector<8x128xf32>
    %20 = vector.extract_strided_slice %19 {offsets = [0, 0], sizes = [8, 4], strides = [1, 1]} : vector<8x128xf32> to vector<8x4xf32>
    %c0_15 = arith.constant 0 : index
    %c0_16 = arith.constant 0 : index
    %21 = vector.load %arg3[%c0_15, %c0_16] : memref<8x4xf32, #tpu.memory_space<vmem>>, vector<8x4xf32>
    tpu.vector_store %arg3[%c0_15, %c0_16], %20 {strides = array<i32>} : memref<8x4xf32, #tpu.memory_space<vmem>>, vector<8x4xf32>,
    return
  }
  func.func @transform_0(%arg0: i32) -> (i32, i32) {
    %c0_i32 = arith.constant 0 : i32
    %c0_i32_0 = arith.constant 0 : i32
    return %arg0, %c0_i32 : i32, i32
  }
  func.func @transform_1(%arg0: i32) -> (i32, i32) {
    %c0_i32 = arith.constant 0 : i32
    %c0_i32_0 = arith.constant 0 : i32
    %c0_i32_1 = arith.constant 0 : i32
    return %c0_i32, %c0_i32_0 : i32, i32
  }
  func.func @transform_2(%arg0: i32) -> (i32, i32) {
    %c0_i32 = arith.constant 0 : i32
    %c0_i32_0 = arith.constant 0 : i32
    return %arg0, %c0_i32 : i32, i32
  }
}

</mosaic_0001>

<bundles_post_ra>
// kernel: qnetwork_forward.1
= control target key start
LH: loop header
LB: loop body
LE: loop exit
PB: predicated region body
PF: predicated region fallthrough
CT: control target
= control target key end

     0   :  { %7 = vsyncpa [#allocation3], 0  ;;  %s588_s0 = inlined_call_operand.hbm [shape: f32[8,8], index: 0, kind: input, shape index: {}]   ;;  %s589_s1 = inlined_call_operand.hbm [shape: f32[136,384], index: 1, kind: input, shape index: {}]   ;;  %s590_s2 = inlined_call_operand.vmem [shape: f32[8,4], index: 2, kind: output, shape index: {}]  }
   0x1   :  { %8 = vsyncpa [#allocation5], 0  ;;  %s513_s9 = smov [#allocation2]   ;;  %s514_s11 = smov [#allocation4]  }
   0x2   :  { %s15_s10 = sshll.u32 %s513_s9, 4  ;;  %s24_s12 = sshll.u32 %s514_s11, 4  ;;  %s16_s10 = int_to_ptr.vmem [resolvable:$true] %s15_s10  ;;  %s535_s12 = int_to_ptr.vmem [resolvable:$true] %s24_s12 }
   0x3   :  { %s465_s15 = scalar_lea.hbm %s588_s0, 128 }
   0x4   :  { %p466_p0 = scmp.ne.s32.totalorder %s588_s0, %s465_s15  ;;  %p469_p1 = scmp.lt.u32.totalorder %s465_s15, %s588_s0 }
   0x6   :  { %p471_p2 = pnand %p469_p1, %p466_p0 }
   0x8   :  { %474 = shalt.err (!%p471_p2)
}
   0x9   :  { %s475_s20 = scalar_lea.vmem %s16_s10, 128  ;;  %p480_p4 = scmp.lt.s32.totalorder %s16_s10, %s16_s10 }
   0xa   :  { %p476_p3 = scmp.ne.s32.totalorder %s16_s10, %s475_s20  ;;  %p481_p5 = scmp.lt.s32.totalorder %s475_s20, %s475_s20 }
   0xc   :  { %p482_p6 = por %p481_p5, %p480_p4 }
   0xe   :  { %p483_p7 = pnand %p482_p6, %p476_p3 }
  0x10   :  { %486 = shalt.err (!%p483_p7)
}
  0x11   :  { %18 = dma.hbm_to_vmem [thread:$0]  %s588_s0, 128, %s16_s10, [#allocation3]  }
  0x12   :  { %s487_s25 = scalar_lea.hbm %s589_s1, 6528 }
  0x13   :  { %p488_p8 = scmp.ne.s32.totalorder %s589_s1, %s487_s25  ;;  %p491_p9 = scmp.lt.u32.totalorder %s487_s25, %s589_s1 }
  0x15   :  { %p493_p10 = pnand %p491_p9, %p488_p8 }
  0x17   :  { %496 = shalt.err (!%p493_p10)
}
  0x18   :  { %s497_s30 = scalar_lea.vmem %s535_s12, 6528  ;;  %p502_p12 = scmp.lt.s32.totalorder %s535_s12, %s535_s12 }
  0x19   :  { %p498_p11 = scmp.ne.s32.totalorder %s535_s12, %s497_s30  ;;  %p503_p13 = scmp.lt.s32.totalorder %s497_s30, %s497_s30 }
  0x1b   :  { %p504_p0 = por %p503_p13, %p502_p12 }
  0x1d   :  { %p505_p1 = pnand %p504_p0, %p498_p11 }
  0x1f   :  { %508 = shalt.err (!%p505_p1)
}
  0x20   :  { %s515_s0 = smov 384   ;;  %s516_s3 = smov 24  }
  0x21   :  { %30 = dma.hbm_to_vmem [thread:$0]  %s589_s1, 6528, %s535_s12, [#allocation5], %s515_s0, %s515_s0, %s516_s3  }
  0x22   :  { %509 = dma.done.wait [#allocation3], 128  }
  0x23   :  { %510 = vsyncadd [#allocation3], 4294967168 }
  0x24   :  { %511 = dma.done.wait [#allocation5], 6528  }
  0x25   :  { %512 = vsyncadd [#allocation5], 4294960768  ;;  %v517_v0 = vmov 0.0   ;;  %vm518_vm0 = vmmov 0   ;;  %v519_v1 = vmov 0.0|0.0   ;;  %vm40_vm1 = vcmask 64512  }
  0x26   :  { %335 = vmatprep.subr.mxu0 %v517_v0  ;;  %337 = vmatprep.mubr.msk.f32.mxu0 %vm518_vm0, %v517_v0  ;;  %v38_v2 = vld [vmem:[#allocation4] sm:$0xff]  ;;  %v37_v3 = vld [vmem:[#allocation2] sm:$0xff]  ;;  %v115_v4 = vld [vmem:[#allocation4 + $0x8] sm:$0xff]  ;;  %vm290_vm2 = vcmask 31744  }
  0x27   :  { %410 = vmatprep.subr.bf16.mxu1 %v519_v1  ;;  %372 = vmatprep.mubr.msk.f32.mxu1 %vm518_vm0, %v517_v0  ;;  %v116_v5 = vld [vmem:[#allocation4 + $0x20] sm:$0xff]  ;;  %v117_v6 = vld [vmem:[#allocation4 + $0x38] sm:$0xff]  ;;  %v118_v7 = vld [vmem:[#allocation4 + $0x50] sm:$0xff] }
  0x28   :  { %336 = vmatpush3.msra.mxu0 %v38_v2  ;;  %v411_v8 = vpack.c.bf16 %v116_v5, %v115_v4  ;;  %v414_v9 = vpack.c.bf16 %v118_v7, %v117_v6  ;;  %v119_v10 = vld [vmem:[#allocation4 + $0x68] sm:$0xff]  ;;  %v120_v11 = vld [vmem:[#allocation4 + $0x80] sm:$0xff]  ;;  %v121_v13 = vld [vmem:[#allocation4 + $0x98] sm:$0xff] }
  0x29   :  { %338 = vmatmul.mubr.msk.f32.vlgmr.msra.gmra.mrb[0].mxu0 %vm40_vm1, %v37_v3  ;;  %434 = vmatprep.subr.bf16.mxu0 %v519_v1  ;;  %v417_v12 = vpack.c.bf16 %v120_v11, %v119_v10  ;;  %v122_v14 = vld [vmem:[#allocation4 + $0xb0] sm:$0xff]  ;;  %v123_v16 = vld [vmem:[#allocation4 + $0xc8] sm:$0xff]  ;;  %v124_v17 = vld [vmem:[#allocation4 + $0xe0] sm:$0xff] }
  0x2a   :  { %407 = vmatprep.mubr.msk.f32.mxu0 %vm518_vm0, %v517_v0  ;;  %412 = vmatpush3.bf16.msra.mxu1 %v411_v8  ;;  %v420_v15 = vpack.c.bf16 %v122_v14, %v121_v13  ;;  %v423_v18 = vpack.c.bf16 %v124_v17, %v123_v16  ;;  %v125_v19 = vld [vmem:[#allocation4 + $0xf8] sm:$0xff]  ;;  %v126_v20 = vld [vmem:[#allocation4 + $0x110] sm:$0xff]  ;;  %v127_v22 = vld [vmem:[#allocation4 + $0x128] sm:$0xff] }
  0x2b   :  { %413 = vmatprep.subr.bf16.mxu1 %v519_v1  ;;  %v426_v21 = vpack.c.bf16 %v126_v20, %v125_v19  ;;  %v128_v23 = vld [vmem:[#allocation4 + $0x140] sm:$0xff]  ;;  %v129_v25 = vld [vmem:[#allocation4 + $0x158] sm:$0xff]  ;;  %v130_v26 = vld [vmem:[#allocation4 + $0x170] sm:$0xff] }
  0x2c   :  { %v429_v24 = vpack.c.bf16 %v128_v23, %v127_v22  ;;  %v432_v27 = vpack.c.bf16 %v130_v26, %v129_v25  ;;  %v203_v28 = vld [vmem:[#allocation4 + $0x10] sm:$0xff]  ;;  %v204_v29 = vld [vmem:[#allocation4 + $0x28] sm:$0xff]  ;;  %v205_v30 = vld [vmem:[#allocation4 + $0x40] sm:$0xff] }
  0x2d   :  { %v435_v31 = vpack.c.bf16 %v204_v29, %v203_v28  ;;  %v206_v32 = vld [vmem:[#allocation4 + $0x58] sm:$0xff]  ;;  %v207_v34 = vld [vmem:[#allocation4 + $0x70] sm:$0xff]  ;;  %v208_v35 = vld [vmem:[#allocation4 + $0x88] sm:$0xff] }
  0x2e   :  { %415 = vmatpush3.bf16.msra.mxu1 %v414_v9  ;;  %v438_v33 = vpack.c.bf16 %v206_v32, %v205_v30  ;;  %v441_v36 = vpack.c.bf16 %v208_v35, %v207_v34  ;;  %v209_v37 = vld [vmem:[#allocation4 + $0xa0] sm:$0xff]  ;;  %v210_v38 = vld [vmem:[#allocation4 + $0xb8] sm:$0xff]  ;;  %v211_v40 = vld [vmem:[#allocation4 + $0xd0] sm:$0xff] }
  0x2f   :  { %416 = vmatprep.subr.bf16.mxu1 %v519_v1  ;;  %436 = vmatpush3.bf16.msra.mxu0 %v435_v31  ;;  %v444_v39 = vpack.c.bf16 %v210_v38, %v209_v37  ;;  %v212_v41 = vld [vmem:[#allocation4 + $0xe8] sm:$0xff]  ;;  %v213_v43 = vld [vmem:[#allocation4 + $0x100] sm:$0xff]  ;;  %v214_v44 = vld [vmem:[#allocation4 + $0x118] sm:$0xff] }
  0x30   :  { %437 = vmatprep.subr.bf16.mxu0 %v519_v1  ;;  %v447_v42 = vpack.c.bf16 %v212_v41, %v211_v40  ;;  %v450_v45 = vpack.c.bf16 %v214_v44, %v213_v43  ;;  %v215_v46 = vld [vmem:[#allocation4 + $0x130] sm:$0xff]  ;;  %v216_v47 = vld [vmem:[#allocation4 + $0x148] sm:$0xff]  ;;  %v39_v49 = vld [vmem:[#allocation4 + $0x180] ss:$0 sm:$0xff] }
  0x31   :  { %v453_v48 = vpack.c.bf16 %v216_v47, %v215_v46  ;;  %v217_v54 = vld [vmem:[#allocation4 + $0x160] sm:$0xff]  ;;  %v218_v55 = vld [vmem:[#allocation4 + $0x178] sm:$0xff]  ;;  %v131_v57 = vld [vmem:[#allocation4 + $0x188] ss:$0 sm:$0xff] }
  0x32   :  { %418 = vmatpush3.bf16.msra.mxu1 %v417_v12  ;;  %v456_v56 = vpack.c.bf16 %v218_v55, %v217_v54  ;;  %v219_v62 = vld [vmem:[#allocation4 + $0x190] ss:$0 sm:$0xff] }
  0x33   :  { %419 = vmatprep.subr.bf16.mxu1 %v519_v1  ;;  %439 = vmatpush3.bf16.msra.mxu0 %v438_v33 }
  0x34   :  { %440 = vmatprep.subr.bf16.mxu0 %v519_v1 }
  0x36   :  { %421 = vmatpush3.bf16.msra.mxu1 %v420_v15 }
  0x37   :  { %422 = vmatprep.subr.bf16.mxu1 %v519_v1  ;;  %442 = vmatpush3.bf16.msra.mxu0 %v441_v36 }
  0x38   :  { %443 = vmatprep.subr.bf16.mxu0 %v519_v1 }
  0x3a   :  { %424 = vmatpush3.bf16.msra.mxu1 %v423_v18 }
  0x3b   :  { %425 = vmatprep.subr.bf16.mxu1 %v519_v1  ;;  %445 = vmatpush3.bf16.msra.mxu0 %v444_v39 }
  0x3c   :  { %446 = vmatprep.subr.bf16.mxu0 %v519_v1 }
  0x3e   :  { %427 = vmatpush3.bf16.msra.mxu1 %v426_v21 }
  0x3f   :  { %428 = vmatprep.subr.bf16.mxu1 %v519_v1  ;;  %448 = vmatpush3.bf16.msra.mxu0 %v447_v42 }
  0x40   :  { %449 = vmatprep.subr.bf16.mxu0 %v519_v1 }
  0x42   :  { %430 = vmatpush3.bf16.msra.mxu1 %v429_v24 }
  0x43   :  { %431 = vmatprep.subr.bf16.mxu1 %v519_v1  ;;  %451 = vmatpush3.bf16.msra.mxu0 %v450_v45 }
  0x44   :  { %452 = vmatprep.subr.bf16.mxu0 %v519_v1 }
  0x46   :  { %433 = vmatpush3.bf16.msra.mxu1 %v432_v27 }
  0x47   :  { %454 = vmatpush3.bf16.msra.mxu0 %v453_v48 }
  0x48   :  { %455 = vmatprep.subr.bf16.mxu0 %v519_v1 }
  0x4b   :  { %457 = vmatpush3.bf16.msra.mxu0 %v456_v56 }
  0xfc   :  { %v110_v50 = vpop.f32.mrb[0].mxu0 }
  0xfd   :  { %v111_v51 = vadd.f32 %v110_v50, %v39_v49  ;;  %v339_v52 = vpop.f32.mrb[1].mxu0 }
  0xff   :  { %v114_v53 = vmax.f32 %v111_v51, 0.0 }
 0x101   :  { %373 = vmatmul.mubr.f32.vlgmr.msra.gmra.mrb[0].mxu1 %v114_v53 }
 0x1d4   :  { %v198_v58 = vpop.f32.mrb[0].mxu1 }
 0x1d5   :  { %v199_v59 = vadd.f32 %v198_v58, %v131_v57  ;;  %v374_v60 = vpop.f32.mrb[1].mxu1 }
 0x1d7   :  { %v202_v61 = vmax.f32 %v199_v59, 0.0 }
 0x1d9   :  { %408 = vmatmul.mubr.f32.vlgmr.msra.gmra.mrb[2].mxu0 %v202_v61 }
 0x2ac   :  { %v286_v63 = vpop.f32.mrb[2].mxu0 }
 0x2ad   :  { %v287_v0 = vadd.f32 %v286_v63, %v219_v62  ;;  %v409_v1 = vpop.f32.mrb[3].mxu0 }
 0x2af   :  { %291 = vst.msk [vmem:[%s590_s2] sm:$0xff] %vm290_vm2, %v287_v0 }
 0x2b0   :  { %296 = vsyncpa [#allocation3], 1 }
 0x2b1   :  { %297 = vsyncpa [#allocation5], 1 }

</bundles_post_ra>
